<compile_context>
chip_gen: v5e
topology: v5e:2x2
jax: 0.10.0
libtpu: 0.0.40
codegen_flags: <defaults>
</compile_context>

<pallas_src>
import jax
import jax.numpy as jnp
from jax import lax
from jax.experimental import pallas as pl
from jax.experimental.pallas import tpu as pltpu

_EPS = 1e-5  # nn.InstanceNorm1d default eps


def _adain_kernel(content_ref, temporal_ref, out_ref):
    # content_ref / out_ref : (NB, TC, L)
    # temporal_ref          : (NB, K,  L)

    # ---- temporal stats (reduce over channel axis K; two-pass, f32) --------
    t = temporal_ref[...].astype(jnp.float32)                  # (NB, K, L)
    k = t.shape[1]
    t_mu = jnp.mean(t, axis=1, keepdims=True)                  # (NB, 1, L)
    td = t - t_mu
    t_var = jnp.sum(td * td, axis=1, keepdims=True) * (1.0 / (k - 1))
    t_std = jnp.sqrt(t_var)                                    # torch.std: no eps

    # ---- content instance-norm (reduce over L; two-pass, f32) --------------
    x = content_ref[...].astype(jnp.float32)                   # (NB, TC, L)
    l = x.shape[-1]
    mu = jnp.sum(x, axis=-1, keepdims=True) * (1.0 / l)        # (NB, TC, 1)
    d = x - mu
    var = jnp.sum(d * d, axis=-1, keepdims=True) * (1.0 / l)   # biased variance
    inv_std = lax.rsqrt(var + _EPS)

    out_ref[...] = (d * inv_std * t_std + t_mu).astype(out_ref.dtype)


def _tpu_budgets():
    """(tile_budget_bytes, vmem_limit_bytes) per TPU generation."""
    kind = ""
    try:
        kind = jax.devices()[0].device_kind.lower()
    except Exception:
        pass
    if "v7" in kind:
        # 64 MiB physical VMEM per TensorCore: keep tiles + scoped limit modest,
        # leaving headroom for double-buffered in/out and f32 temporaries.
        return 3 * 1024 * 1024, 48 * 1024 * 1024
    if "v6" in kind or "v5" in kind:
        # 128 MiB physical VMEM: larger tiles push DMA onto the roofline plateau.
        return 6 * 1024 * 1024, 96 * 1024 * 1024
    # Unknown device: conservative defaults that fit everywhere.
    return 3 * 1024 * 1024, 48 * 1024 * 1024


def adain(encoded_content, encoded_temporal):
    """encoded_content: (N, C, L), encoded_temporal: (N, K, L) -> (N, C, L)."""
    N, C, L = encoded_content.shape
    Nt, K, Lt = encoded_temporal.shape
    assert N == Nt and L == Lt, "batch / length dims must match"
    assert K > 1, "unbiased std needs at least 2 elements along dim 1"

    dtype = encoded_content.dtype
    itemsize = jnp.dtype(dtype).itemsize

    tile_budget, vmem_limit = _tpu_budgets()

    # ---- joint (NB, TC) sizing: NB * TC * L * itemsize ≈ tile_budget --------
    row_bytes = max(L * itemsize, 1)                 # one (batch, channel) row
    rows_budget = max(1, tile_budget // row_bytes)   # rows per content tile

    if C <= rows_budget:
        TC = C                                       # full channel dim (no 8-divisibility needed)
        NB = min(N, max(1, rows_budget // C))        # pack batches into the tile
    else:
        NB = 1
        TC = max(8, (rows_budget // 8) * 8)          # multiple of 8
        TC = min(TC, C)                              # == C or a multiple of 8 < C

    # C axis last/fastest so consecutive steps reuse the same temporal block
    # (its DMA is skipped within a core); both axes "parallel" so v7x's two
    # TensorCores split the grid whenever there is more than one step.
    grid = (pl.cdiv(N, NB), pl.cdiv(C, TC))

    cost = pl.CostEstimate(
        flops=8 * N * C * L + 6 * N * K * L,
        transcendentals=N * C + N * L,
        bytes_accessed=(2 * N * C * L + N * K * L) * itemsize,
    )

    out = pl.pallas_call(
        _adain_kernel,
        out_shape=jax.ShapeDtypeStruct((N, C, L), dtype),
        grid_spec=pltpu.PrefetchScalarGridSpec(
            num_scalar_prefetch=0,
            grid=grid,
            in_specs=[
                pl.BlockSpec((NB, TC, L), lambda n, c: (n, c, 0)),
                pl.BlockSpec((NB, K, L), lambda n, c: (n, 0, 0)),
            ],
            out_specs=pl.BlockSpec((NB, TC, L), lambda n, c: (n, c, 0)),
        ),
        compiler_params=pltpu.CompilerParams(
            dimension_semantics=("parallel", "parallel"),
            vmem_limit_bytes=vmem_limit,
        ),
        cost_estimate=cost,
    )(encoded_content, encoded_temporal)

    return out


def _adain_ref(encoded_content, encoded_temporal):
    """Pure-JAX reference mirroring the PyTorch forward."""
    x = encoded_content.astype(jnp.float32)
    t = encoded_temporal.astype(jnp.float32)
    mu = jnp.mean(x, axis=-1, keepdims=True)
    var = jnp.mean((x - mu) ** 2, axis=-1, keepdims=True)
    x_norm = (x - mu) / jnp.sqrt(var + _EPS)
    t_mu = jnp.mean(t, axis=1, keepdims=True)
    t_std = jnp.std(t, axis=1, ddof=1, keepdims=True)
    return (x_norm * t_std + t_mu).astype(encoded_content.dtype)


if __name__ == "__main__":
    key = jax.random.PRNGKey(0)
    k1, k2, k3, k4 = jax.random.split(key, 4)

    # Primary case: lane-dense L.
    N, C, L = 2, 8, 128   # batch, channels (input_size), sequence length
    K = 8                 # temporal-encoding channels (reduced over)
    encoded_content = jax.random.normal(k1, (N, C, L), dtype=jnp.float32)
    encoded_temporal = jax.random.normal(k2, (N, K, L), dtype=jnp.float32)

    out = adain(encoded_content, encoded_temporal)
    jax.block_until_ready(out)
    ref = _adain_ref(encoded_content, encoded_temporal)
    assert out.shape == (N, C, L)
    assert jnp.allclose(out, ref, atol=1e-4, rtol=1e-4)

    # Secondary case: L not a multiple of 128 — full-L blocks, no padding.
    N2, C2, L2, K2 = 2, 12, 100, 6
    content2 = jax.random.normal(k3, (N2, C2, L2), dtype=jnp.float32)
    temporal2 = jax.random.normal(k4, (N2, K2, L2), dtype=jnp.float32)
    out2 = adain(content2, temporal2)
    jax.block_until_ready(out2)
    ref2 = _adain_ref(content2, temporal2)
    assert out2.shape == (N2, C2, L2)
    assert jnp.allclose(out2, ref2, atol=1e-4, rtol=1e-4)

    print("KERNEL_OK")
</pallas_src>

<mosaic_0001>
module attributes {stable_mosaic.version = 11 : i64} {
  func.func @_adain_kernel(%arg0: i32, %arg1: i32, %arg2: memref<2x8x128xf32, #tpu.memory_space<vmem>>, %arg3: memref<2x8x128xf32, #tpu.memory_space<vmem>>, %arg4: memref<2x8x128xf32, #tpu.memory_space<vmem>>) attributes {dimension_semantics = [#tpu.dimension_semantics<parallel>, #tpu.dimension_semantics<parallel>], iteration_bounds = array<i64: 1, 1>, scalar_prefetch = 0 : i64, scratch_operands = 0 : i64, tpu.core_type = #tpu.core_type<tc>, window_params = [{transform_indices = @transform_0, window_bounds = array<i64: 2, 8, 128>}, {transform_indices = @transform_1, window_bounds = array<i64: 2, 8, 128>}, {transform_indices = @transform_2, window_bounds = array<i64: 2, 8, 128>}]} {
    %c0 = arith.constant 0 : index
    %c0_0 = arith.constant 0 : index
    %c0_1 = arith.constant 0 : index
    %0 = vector.load %arg3[%c0, %c0_0, %c0_1] : memref<2x8x128xf32, #tpu.memory_space<vmem>>, vector<2x8x128xf32>
    %cst = arith.constant dense<0.000000e+00> : vector<2x128xf32>
    %1 = vector.multi_reduction <add>, %0, %cst [1] : vector<2x8x128xf32> to vector<2x128xf32>
    %2 = vector.shape_cast %1 : vector<2x128xf32> to vector<2x1x128xf32>
    %cst_2 = arith.constant 8.000000e+00 : f32
    %3 = vector.broadcast %cst_2 : f32 to vector<2x1x128xf32>
    %4 = arith.divf %2, %3 : vector<2x1x128xf32>
    %5 = vector.broadcast %4 : vector<2x1x128xf32> to vector<2x8x128xf32>
    %6 = arith.subf %0, %5 : vector<2x8x128xf32>
    %7 = arith.mulf %6, %6 : vector<2x8x128xf32>
    %cst_3 = arith.constant dense<0.000000e+00> : vector<2x128xf32>
    %8 = vector.multi_reduction <add>, %7, %cst_3 [1] : vector<2x8x128xf32> to vector<2x128xf32>
    %9 = vector.shape_cast %8 : vector<2x128xf32> to vector<2x1x128xf32>
    %cst_4 = arith.constant 0.142857149 : f32
    %10 = vector.broadcast %cst_4 : f32 to vector<2x1x128xf32>
    %11 = arith.mulf %9, %10 : vector<2x1x128xf32>
    %12 = math.sqrt %11 : vector<2x1x128xf32>
    %c0_5 = arith.constant 0 : index
    %c0_6 = arith.constant 0 : index
    %c0_7 = arith.constant 0 : index
    %13 = vector.load %arg2[%c0_5, %c0_6, %c0_7] : memref<2x8x128xf32, #tpu.memory_space<vmem>>, vector<2x8x128xf32>
    %cst_8 = arith.constant dense<0.000000e+00> : vector<2x8xf32>
    %14 = vector.multi_reduction <add>, %13, %cst_8 [2] : vector<2x8x128xf32> to vector<2x8xf32>
    %15 = vector.shape_cast %14 : vector<2x8xf32> to vector<2x8x1xf32>
    %cst_9 = arith.constant 7.812500e-03 : f32
    %16 = vector.broadcast %cst_9 : f32 to vector<2x8x1xf32>
    %17 = arith.mulf %15, %16 : vector<2x8x1xf32>
    %18 = vector.broadcast %17 : vector<2x8x1xf32> to vector<2x8x128xf32>
    %19 = arith.subf %13, %18 : vector<2x8x128xf32>
    %20 = arith.mulf %19, %19 : vector<2x8x128xf32>
    %cst_10 = arith.constant dense<0.000000e+00> : vector<2x8xf32>
    %21 = vector.multi_reduction <add>, %20, %cst_10 [2] : vector<2x8x128xf32> to vector<2x8xf32>
    %22 = vector.shape_cast %21 : vector<2x8xf32> to vector<2x8x1xf32>
    %cst_11 = arith.constant 7.812500e-03 : f32
    %23 = vector.broadcast %cst_11 : f32 to vector<2x8x1xf32>
    %24 = arith.mulf %22, %23 : vector<2x8x1xf32>
    %cst_12 = arith.constant 9.99999974E-6 : f32
    %25 = vector.broadcast %cst_12 : f32 to vector<2x8x1xf32>
    %26 = arith.addf %24, %25 : vector<2x8x1xf32>
    %27 = math.rsqrt %26 : vector<2x8x1xf32>
    %28 = vector.broadcast %27 : vector<2x8x1xf32> to vector<2x8x128xf32>
    %29 = arith.mulf %19, %28 : vector<2x8x128xf32>
    %30 = vector.broadcast %12 : vector<2x1x128xf32> to vector<2x8x128xf32>
    %31 = arith.mulf %29, %30 : vector<2x8x128xf32>
    %32 = vector.broadcast %4 : vector<2x1x128xf32> to vector<2x8x128xf32>
    %33 = arith.addf %31, %32 : vector<2x8x128xf32>
    %c0_13 = arith.constant 0 : index
    %c0_14 = arith.constant 0 : index
    %c0_15 = arith.constant 0 : index
    %34 = vector.load %arg4[%c0_13, %c0_14, %c0_15] : memref<2x8x128xf32, #tpu.memory_space<vmem>>, vector<2x8x128xf32>
    tpu.vector_store %arg4[%c0_13, %c0_14, %c0_15], %33 {strides = array<i32>} : memref<2x8x128xf32, #tpu.memory_space<vmem>>, vector<2x8x128xf32>,
    return
  }
  func.func @transform_0(%arg0: i32, %arg1: i32) -> (i32, i32, i32) {
    %c0_i32 = arith.constant 0 : i32
    %c0_i32_0 = arith.constant 0 : i32
    return %arg0, %arg1, %c0_i32 : i32, i32, i32
  }
  func.func @transform_1(%arg0: i32, %arg1: i32) -> (i32, i32, i32) {
    %c0_i32 = arith.constant 0 : i32
    %c0_i32_0 = arith.constant 0 : i32
    %c0_i32_1 = arith.constant 0 : i32
    return %arg0, %c0_i32, %c0_i32_0 : i32, i32, i32
  }
  func.func @transform_2(%arg0: i32, %arg1: i32) -> (i32, i32, i32) {
    %c0_i32 = arith.constant 0 : i32
    %c0_i32_0 = arith.constant 0 : i32
    return %arg0, %arg1, %c0_i32 : i32, i32, i32
  }
}

</mosaic_0001>

<bundles_post_ra>
// kernel: tpu_custom_call.1
= control target key start
LH: loop header
LB: loop body
LE: loop exit
PB: predicated region body
PF: predicated region fallthrough
CT: control target
= control target key end

     0   :  { %7 = vsyncpa [#allocation3], 0  ;;  %s328_s0 = inlined_call_operand.hbm [shape: f32[2,8,128], index: 0, kind: input, shape index: {}]   ;;  %s329_s1 = inlined_call_operand.hbm [shape: f32[2,8,128], index: 1, kind: input, shape index: {}]   ;;  %s330_s2 = inlined_call_operand.hbm [shape: f32[2,8,128], index: 2, kind: output, shape index: {}]  }
   0x1   :  { %8 = vsyncpa [#allocation6], 0 }
   0x2   :  { %9 = vsyncpa [#allocation4], 0  ;;  %s14_s11 = sshll.u32 %s328_s0, 4  ;;  %s271_s12 = smov [#allocation2]   ;;  %s15_s11 = int_to_ptr.hbm [resolvable:$true] %s14_s11 }
   0x3   :  { %s16_s13 = sshll.u32 %s271_s12, 4  ;;  %s27_s16 = sshll.u32 %s329_s1, 4  ;;  %s17_s13 = int_to_ptr.vmem [resolvable:$true] %s16_s13  ;;  %s28_s16 = int_to_ptr.hbm [resolvable:$true] %s27_s16 }
   0x4   :  { %s272_s17 = smov 128   ;;  %s273_s18 = smov 8  }
   0x5   :  { %22 = dma.hbm_to_vmem [thread:$0]  %s15_s11, 256, %s17_s13, [#allocation3], %s272_s17, %s272_s17, %s273_s18  }
   0x6   :  { %s274_s19 = smov [#allocation5]  }
   0x7   :  { %s29_s20 = sshll.u32 %s274_s19, 4  ;;  %s30_s20 = int_to_ptr.vmem [resolvable:$true] %s29_s20 }
   0x8   :  { %35 = dma.hbm_to_vmem [thread:$0]  %s28_s16, 256, %s30_s20, [#allocation6], %s272_s17, %s272_s17, %s273_s18  }
   0x9   :  { %265 = dma.done.wait [#allocation3], 256  }
   0xa   :  { %266 = vsyncadd [#allocation3], 4294967040 }
   0xb   :  { %267 = dma.done.wait [#allocation6], 256  }
   0xc   :  { %268 = vsyncadd [#allocation6], 4294967040  ;;  %v109_v0 = vld [vmem:[#allocation2] sm:$0xff]  ;;  %v110_v1 = vld [vmem:[#allocation2 + $0x8] sm:$0xff]  ;;  %v275_v10 = vmov 8.0   ;;  %s276_s0 = smov [#allocation7]  }
   0xd   :  { %111 = vadd.xlane.f32.xlu0 %v109_v0  ;;  %183 = vrcp.f32 %v275_v10  ;;  %v44_v11 = vld [vmem:[#allocation5] sm:$0xff]  ;;  %v45_v19 = vld [vmem:[#allocation5 + $0x8] sm:$0xff]  ;;  %s161_s1 = sshll.u32 %s276_s0, 4  ;;  %s163_s23 = sshll.u32 %s330_s2, 4  ;;  %s162_s1 = int_to_ptr.vmem [resolvable:$true] %s161_s1  ;;  %s164_s23 = int_to_ptr.hbm [resolvable:$true] %s163_s23 }
   0xe   :  { %v46_v12 = vrot.slane %v44_v11, 4  ;;  %v52_v22 = vrot.slane %v45_v19, 4 }
  0x10   :  { %v47_v14 = vadd.f32 %v46_v12, %v44_v11  ;;  %v53_v25 = vadd.f32 %v52_v22, %v45_v19 }
  0x12   :  { %v48_v16 = vrot.slane %v47_v14, 2  ;;  %v54_v27 = vrot.slane %v53_v25, 2 }
  0x13   :  { %v184_v13 = vpop.eup %183 }
  0x14   :  { %v59_v15 = vmul.f32 8.0, %v184_v13  ;;  %v49_v18 = vadd.f32 %v48_v16, %v47_v14  ;;  %vm63_vm0 = vweird.f32 %v184_v13  ;;  %v55_v29 = vadd.f32 %v54_v27, %v53_v25 }
  0x15   :  { %113 = vadd.xlane.f32.xlu0 %v110_v1 }
  0x16   :  { %v60_v17 = vsub.f32 1.0, %v59_v15  ;;  %v50_v21 = vrot.slane %v49_v18, 1  ;;  %v56_v31 = vrot.slane %v55_v29, 1 }
  0x18   :  { %v61_v20 = vmul.f32 %v184_v13, %v60_v17  ;;  %v51_v24 = vadd.f32 %v50_v21, %v49_v18  ;;  %v57_v33 = vadd.f32 %v56_v31, %v55_v29 }
  0x1a   :  { %v62_v23 = vadd.f32 %v184_v13, %v61_v20 }
  0x1c   :  { %v64_v26 = vsel %vm63_vm0, %v184_v13, %v62_v23 }
  0x1d   :  { %v312_v28 = vmul.f32 %v64_v26, %v51_v24  ;;  %v315_v35 = vmul.f32 %v64_v26, %v57_v33 }
  0x1f   :  { %v67_v30 = vsub.f32 %v44_v11, %v312_v28  ;;  %v68_v36 = vsub.f32 %v45_v19, %v315_v35 }
  0x21   :  { %v69_v32 = vmul.f32 %v67_v30, %v67_v30  ;;  %v70_v38 = vmul.f32 %v68_v36, %v68_v36 }
  0x23   :  { %v71_v34 = vrot.slane %v69_v32, 4  ;;  %v77_v40 = vrot.slane %v70_v38, 4 }
  0x25   :  { %v72_v37 = vadd.f32 %v71_v34, %v69_v32  ;;  %v78_v42 = vadd.f32 %v77_v40, %v70_v38 }
  0x27   :  { %v73_v39 = vrot.slane %v72_v37, 2  ;;  %v79_v44 = vrot.slane %v78_v42, 2 }
  0x29   :  { %v74_v41 = vadd.f32 %v73_v39, %v72_v37  ;;  %v80_v46 = vadd.f32 %v79_v44, %v78_v42 }
  0x2b   :  { %v75_v43 = vrot.slane %v74_v41, 1  ;;  %v81_v47 = vrot.slane %v80_v46, 1 }
  0x2d   :  { %v76_v45 = vadd.f32 %v75_v43, %v74_v41  ;;  %v82_v49 = vadd.f32 %v81_v47, %v80_v46 }
  0x2f   :  { %v83_v48 = vmul.f32 0.14285715, %v76_v45  ;;  %v84_v50 = vmul.f32 0.14285715, %v82_v49 }
  0x31   :  { %185 = vrsqrt.f32 %v83_v48  ;;  %vm92_vm1 = vcmp.eq.f32.partialorder %v83_v48, inf  ;;  %v95_v12 = vand.u32 2147483648, %v83_v48  ;;  %vm94_vm3 = vcmp.eq.f32.partialorder %v83_v48, 0.0 }
  0x32   :  { %187 = vrsqrt.f32 %v84_v50  ;;  %vm104_vm6 = vcmp.eq.f32.partialorder %v84_v50, inf  ;;  %v107_v26 = vand.u32 2147483648, %v84_v50  ;;  %vm106_vm8 = vcmp.eq.f32.partialorder %v84_v50, 0.0 }
  0x37   :  { %v186_v51 = vpop.eup %185 }
  0x38   :  { %v86_v52 = vmul.f32 %v186_v51, %v83_v48  ;;  %v188_v54 = vpop.eup %187 }
  0x39   :  { %v98_v59 = vmul.f32 %v188_v54, %v84_v50 }
  0x3a   :  { %v87_v53 = vmul.f32 %v186_v51, %v86_v52 }
  0x3b   :  { %v99_v61 = vmul.f32 %v188_v54, %v98_v59 }
  0x3c   :  { %v88_v58 = vmul.f32 0.5, %v87_v53 }
  0x3e   :  { %v89_v60 = vsub.f32 1.5, %v88_v58 }
  0x80   :  { %v112_v2 = vpop.xlane.xlu0 %111 }
  0x81   :  { %v115_v3 = vmul.f32 0.0078125, %v112_v2  ;;  %v90_v2 = vmul.f32 %v186_v51, %v89_v60 }
  0x83   :  { %v304_v4 = vsub.f32 %v109_v0, %v115_v3  ;;  %v100_v3 = vmul.f32 0.5, %v99_v61 }
  0x85   :  { %v119_v5 = vmul.f32 %v304_v4, %v304_v4 }
  0x87   :  { %121 = vadd.xlane.f32.xlu1 %v119_v5 }
  0x88   :  { %v114_v6 = vpop.xlane.xlu0 %113 }
  0x89   :  { %v116_v7 = vmul.f32 0.0078125, %v114_v6 }
  0x8b   :  { %v308_v8 = vsub.f32 %v110_v1, %v116_v7  ;;  %v91_v7 = vmul.f32 %v90_v2, %v83_v48 }
  0x8d   :  { %v120_v9 = vmul.f32 %v308_v8, %v308_v8  ;;  %v93_v14 = vsel %vm92_vm1, %v83_v48, %v91_v7 }
  0x8e   :  { %v96_v20 = vsel %vm94_vm3, %v95_v12, %v93_v14 }
  0x8f   :  { %123 = vadd.xlane.f32.xlu1 %v120_v9  ;;  %v101_v9 = vsub.f32 1.5, %v100_v3 }
  0x91   :  { %v102_v15 = vmul.f32 %v188_v54, %v101_v9 }
  0x93   :  { %v103_v22 = vmul.f32 %v102_v15, %v84_v50 }
  0x95   :  { %v105_v27 = vsel %vm104_vm6, %v84_v50, %v103_v22 }
  0x96   :  { %v108_v32 = vsel %vm106_vm8, %v107_v26, %v105_v27 }
  0xfa   :  { %v122_v55 = vpop.xlane.xlu1 %121 }
  0xfb   :  { %v125_v56 = vmul.f32 0.0078125, %v122_v55 }
  0xfd   :  { %v127_v57 = vadd.f32 1e-05, %v125_v56 }
  0xff   :  { %189 = vrsqrt.f32 %v127_v57  ;;  %vm135_vm4 = vweird.f32 %v127_v57 }
 0x102   :  { %v124_v62 = vpop.xlane.xlu1 %123 }
 0x103   :  { %v126_v63 = vmul.f32 0.0078125, %v124_v62 }
 0x105   :  { %v190_v0 = vpop.eup %189  ;;  %v128_v1 = vadd.f32 1e-05, %v126_v63 }
 0x106   :  { %v130_v5 = vmul.f32 %v190_v0, %v127_v57  ;;  %vm136_vm2 = vweird.f32 %v190_v0 }
 0x107   :  { %191 = vrsqrt.f32 %v128_v1  ;;  %vm137_vm5 = vmor %vm135_vm4, %vm136_vm2  ;;  %vm145_vm9 = vweird.f32 %v128_v1 }
 0x108   :  { %v131_v6 = vmul.f32 %v190_v0, %v130_v5 }
 0x10a   :  { %v132_v10 = vmul.f32 0.5, %v131_v6 }
 0x10c   :  { %v133_v11 = vsub.f32 1.5, %v132_v10 }
 0x10d   :  { %v192_v13 = vpop.eup %191 }
 0x10e   :  { %v134_v16 = vmul.f32 %v190_v0, %v133_v11  ;;  %v140_v17 = vmul.f32 %v192_v13, %v128_v1  ;;  %vm146_vm7 = vweird.f32 %v192_v13 }
 0x10f   :  { %vm147_vm10 = vmor %vm145_vm9, %vm146_vm7 }
 0x110   :  { %v138_v18 = vsel %vm137_vm5, %v190_v0, %v134_v16  ;;  %v141_v19 = vmul.f32 %v192_v13, %v140_v17 }
 0x111   :  { %v149_v21 = vmul.f32 %v138_v18, %v304_v4 }
 0x112   :  { %v142_v23 = vmul.f32 0.5, %v141_v19 }
 0x113   :  { %v151_v24 = vmul.f32 %v149_v21, %v96_v20 }
 0x114   :  { %v143_v25 = vsub.f32 1.5, %v142_v23 }
 0x115   :  { %v153_v29 = vadd.f32 %v151_v24, %v312_v28 }
 0x116   :  { %v144_v30 = vmul.f32 %v192_v13, %v143_v25 }
 0x117   :  { %155 = vst [vmem:[#allocation7] sm:$0xff] %v153_v29 }
 0x118   :  { %v148_v31 = vsel %vm147_vm10, %v192_v13, %v144_v30 }
 0x119   :  { %v150_v33 = vmul.f32 %v148_v31, %v308_v8 }
 0x11b   :  { %v152_v4 = vmul.f32 %v150_v33, %v108_v32 }
 0x11d   :  { %v154_v34 = vadd.f32 %v152_v4, %v315_v35 }
 0x11f   :  { %156 = vst [vmem:[#allocation7 + $0x8] sm:$0xff] %v154_v34 }
 0x120   :  { %169 = dma.vmem_to_hbm [thread:$0]  %s162_s1, 256, %s164_s23, [#allocation4], %s272_s17, %s272_s17, %s273_s18  }
 0x121   :  { %269 = dma.done.wait [#allocation4], 256  }
 0x122   :  { %270 = vsyncadd [#allocation4], 4294967040 }
 0x123   :  { %174 = vsyncpa [#allocation3], 1 }
 0x124   :  { %175 = vsyncpa [#allocation6], 1 }
 0x125   :  { %176 = vsyncpa [#allocation4], 1 }

</bundles_post_ra>
